<compile_context>
chip_gen: v6e
topology: v6e:2x2x1
jax: 0.10.0
libtpu: 0.0.40
codegen_flags: <defaults>
</compile_context>

<pallas_src>
import functools

import jax
import jax.numpy as jnp
from jax.experimental import pallas as pl
from jax.experimental.pallas import tpu as pltpu


def _rk4_kernel(*refs, num_layers, dt, num_steps):
    # refs = (xT_ref, w0, b0, w1, b1, ..., wL, bL, outT_ref)
    x_ref = refs[0]
    out_ref = refs[-1]
    wb_refs = refs[1:-1]
    assert len(wb_refs) == 2 * num_layers

    b_tile = x_ref.shape[-1]  # batch tile size (lane axis)

    # Hoist weight/bias loads out of the 4 stage evaluations: Ref reads are not
    # CSE'd, so without this every weight would be pulled from VMEM 4x per step.
    ws = [wb_refs[2 * l][...].astype(jnp.float32) for l in range(num_layers)]
    # Pre-broadcast biases (out_l, 1) -> (out_l, b_tile) once.
    bs = [
        jnp.broadcast_to(
            wb_refs[2 * l + 1][...].astype(jnp.float32),
            (wb_refs[2 * l + 1].shape[0], b_tile),
        )
        for l in range(num_layers)
    ]

    def mlp(h):
        # h: (features, b_tile); layer l computes W_l @ h + b_l on the MXU.
        for l in range(num_layers):
            h = jnp.dot(ws[l], h, preferred_element_type=jnp.float32) + bs[l]
            if l != num_layers - 1:
                h = jnp.maximum(h, 0.0)  # ReLU on all but the last layer
        return h

    # Precomputed scales: no divisions in the hot path.
    dt_f = jnp.float32(dt)
    half_dt = jnp.float32(0.5 * dt)
    c_sixth = jnp.float32(dt / 6.0)
    c_third = jnp.float32(dt / 3.0)

    def rk4_step(_, x0):
        k1 = mlp(x0)
        k2 = mlp(x0 + half_dt * k1)
        k3 = mlp(x0 + half_dt * k2)
        k4 = mlp(x0 + dt_f * k3)
        # x0 + dt*k1/6 + dt*k2/3 + dt*k3/3 + dt*k4/6
        return x0 + c_sixth * (k1 + k4) + c_third * (k2 + k3)

    x0 = x_ref[...].astype(jnp.float32)
    if num_steps <= 4:
        # Fully unroll short step counts: static trip count, LLO sees the
        # whole schedule, no loop-carried live-range gating.
        x_final = x0
        for _ in range(num_steps):
            x_final = rk4_step(0, x_final)
    else:
        # Fused multi-step integration: weights stay VMEM-resident, one launch.
        x_final = jax.lax.fori_loop(0, num_steps, rk4_step, x0)
    out_ref[...] = x_final.astype(out_ref.dtype)


def _pick_batch_tile(batch):
    """Largest lane-friendly tile: big multiple of 128 if possible, else full batch."""
    if batch % 128 == 0:
        for cand in (1024, 512, 256, 128):
            if batch % cand == 0:
                return cand
    return batch  # small / irregular batch: single full-array block


def rk4_forward(x, weights, biases, dt, *, num_steps=1, batch_tile=None):
    """One (or `num_steps` fused) RK4 step(s) of dx/dt = MLP(x).

    x:        (B, D) state, D = input_dim = output_dim.
    weights:  list of (out_l, in_l) matrices (PyTorch nn.Linear layout).
    biases:   list of (out_l, 1) column biases.
    """
    num_layers = len(weights)
    assert len(biases) == num_layers
    B, D = x.shape

    # Lane-dense layout plumbing: put batch on the lane (last) axis.
    xT = jnp.transpose(x)  # (D, B)

    if batch_tile is None:
        batch_tile = _pick_batch_tile(B)
    assert B % batch_tile == 0, "batch must be divisible by the batch tile"
    grid = (B // batch_tile,)

    kernel = functools.partial(
        _rk4_kernel, num_layers=num_layers, dt=float(dt), num_steps=int(num_steps)
    )

    operands = [xT]
    in_specs = [pl.BlockSpec((D, batch_tile), lambda i: (0, i))]
    for w, b in zip(weights, biases):
        operands.append(w)
        operands.append(b)
        # Same block for every grid step -> weights/biases stay VMEM-resident.
        in_specs.append(pl.BlockSpec(w.shape, lambda i: (0, 0)))
        in_specs.append(pl.BlockSpec(b.shape, lambda i: (0, 0)))

    outT = pl.pallas_call(
        kernel,
        out_shape=jax.ShapeDtypeStruct((D, B), x.dtype),
        grid=grid,
        in_specs=in_specs,
        out_specs=pl.BlockSpec((D, batch_tile), lambda i: (0, i)),
        input_output_aliases={0: 0},  # update the state buffer in place
        compiler_params=pltpu.CompilerParams(
            dimension_semantics=("parallel",),
            vmem_limit_bytes=32 * 1024 * 1024,
        ),
    )(*operands)

    return jnp.transpose(outT)  # back to (B, D)


def init_mlp_params(key, input_dim, hidden_dim, output_dim, nn_depth):
    """Mimics the PyTorch MLP: Linear(in,h), (nn_depth-1)x Linear(h,h), Linear(h,out).
    Weights are (out, in) like nn.Linear; biases are (out, 1) columns.
    Uniform(-1/sqrt(fan_in), 1/sqrt(fan_in)) init, like nn.Linear."""
    dims = [input_dim] + [hidden_dim] * nn_depth + [output_dim]
    weights, biases = [], []
    for i in range(len(dims) - 1):
        fan_in, fan_out = dims[i], dims[i + 1]
        key, kw, kb = jax.random.split(key, 3)
        bound = 1.0 / (fan_in ** 0.5)
        w = jax.random.uniform(kw, (fan_out, fan_in), jnp.float32, -bound, bound)
        b = jax.random.uniform(kb, (fan_out, 1), jnp.float32, -bound, bound)
        weights.append(w)
        biases.append(b)
    return weights, biases


def rk4_reference(x, weights, biases, dt, num_steps=1):
    """Pure-JAX reference (batch-major layout) for correctness checking."""

    def mlp(h):
        n = len(weights)
        for i, (w, b) in enumerate(zip(weights, biases)):
            h = h @ w.T + b[:, 0]
            if i != n - 1:
                h = jnp.maximum(h, 0.0)
        return h

    for _ in range(num_steps):
        x1 = dt * mlp(x)
        x2 = dt * mlp(x + x1 / 2.0)
        x3 = dt * mlp(x + x2 / 2.0)
        x4 = dt * mlp(x + x3)
        x = x + x1 / 6.0 + x2 / 3.0 + x3 / 3.0 + x4 / 6.0
    return x


if __name__ == "__main__":
    # Small, RK4-consistent shapes: output_dim == input_dim so x0 + dt*f(x0) is valid.
    batch = 8
    input_dim = 8
    hidden_dim = 32
    output_dim = 8
    nn_depth = 2
    dt = 0.1

    key = jax.random.PRNGKey(0)
    key, kx = jax.random.split(key)
    x = jax.random.normal(kx, (batch, input_dim), jnp.float32)
    weights, biases = init_mlp_params(key, input_dim, hidden_dim, output_dim, nn_depth)

    # --- single RK4 step (matches the PyTorch module forward) ---
    step_fn = jax.jit(lambda xx: rk4_forward(xx, weights, biases, dt))
    out = jax.block_until_ready(step_fn(x))
    ref = rk4_reference(x, weights, biases, dt)
    assert out.shape == (batch, input_dim)
    assert jnp.allclose(out, ref, atol=1e-5, rtol=1e-5), "single-step mismatch"

    # --- fused multi-step integration inside one kernel launch (unrolled path) ---
    n_steps = 3
    multi_fn = jax.jit(
        lambda xx: rk4_forward(xx, weights, biases, dt, num_steps=n_steps)
    )
    out_multi = jax.block_until_ready(multi_fn(x))
    ref_multi = rk4_reference(x, weights, biases, dt, num_steps=n_steps)
    assert jnp.allclose(out_multi, ref_multi, atol=1e-4, rtol=1e-4), "multi-step mismatch"

    # --- fused multi-step via the fori_loop path (num_steps > 4) ---
    n_steps_long = 6
    long_fn = jax.jit(
        lambda xx: rk4_forward(xx, weights, biases, dt, num_steps=n_steps_long)
    )
    out_long = jax.block_until_ready(long_fn(x))
    ref_long = rk4_reference(x, weights, biases, dt, num_steps=n_steps_long)
    assert jnp.allclose(out_long, ref_long, atol=1e-4, rtol=1e-4), "long-step mismatch"

    # --- larger batch exercising the lane-dense parallel grid (2 tiles of 128) ---
    x_big = jax.random.normal(jax.random.PRNGKey(1), (256, input_dim), jnp.float32)
    big_fn = jax.jit(
        lambda xx: rk4_forward(xx, weights, biases, dt, batch_tile=128)
    )
    out_big = jax.block_until_ready(big_fn(x_big))
    ref_big = rk4_reference(x_big, weights, biases, dt)
    assert jnp.allclose(out_big, ref_big, atol=1e-5, rtol=1e-5), "batched mismatch"

    print("KERNEL_OK")
</pallas_src>

<mosaic_0001>
module attributes {stable_mosaic.version = 11 : i64} {
  func.func @_rk4_kernel(%arg0: i32, %arg1: memref<8x8xf32, #tpu.memory_space<vmem>>, %arg2: memref<32x8xf32, #tpu.memory_space<vmem>>, %arg3: memref<32x1xf32, #tpu.memory_space<vmem>>, %arg4: memref<32x32xf32, #tpu.memory_space<vmem>>, %arg5: memref<32x1xf32, #tpu.memory_space<vmem>>, %arg6: memref<8x32xf32, #tpu.memory_space<vmem>>, %arg7: memref<8x1xf32, #tpu.memory_space<vmem>>, %arg8: memref<8x8xf32, #tpu.memory_space<vmem>>) attributes {dimension_semantics = [#tpu.dimension_semantics<parallel>], iteration_bounds = array<i64: 1>, scalar_prefetch = 0 : i64, scratch_operands = 0 : i64, tpu.core_type = #tpu.core_type<tc>, window_params = [{transform_indices = @transform_0, window_bounds = array<i64: 8, 8>}, {pipeline_mode = #tpu.pipeline_mode<synchronous>, transform_indices = @transform_1, window_bounds = array<i64: 32, 8>}, {pipeline_mode = #tpu.pipeline_mode<synchronous>, transform_indices = @transform_2, window_bounds = array<i64: 32, 1>}, {pipeline_mode = #tpu.pipeline_mode<synchronous>, transform_indices = @transform_3, window_bounds = array<i64: 32, 32>}, {pipeline_mode = #tpu.pipeline_mode<synchronous>, transform_indices = @transform_4, window_bounds = array<i64: 32, 1>}, {pipeline_mode = #tpu.pipeline_mode<synchronous>, transform_indices = @transform_5, window_bounds = array<i64: 8, 32>}, {pipeline_mode = #tpu.pipeline_mode<synchronous>, transform_indices = @transform_6, window_bounds = array<i64: 8, 1>}, {transform_indices = @transform_7, window_bounds = array<i64: 8, 8>}]} {
    %c0 = arith.constant 0 : index
    %c0_0 = arith.constant 0 : index
    %0 = vector.load %arg2[%c0, %c0_0] : memref<32x8xf32, #tpu.memory_space<vmem>>, vector<32x8xf32>
    %c0_1 = arith.constant 0 : index
    %c0_2 = arith.constant 0 : index
    %1 = vector.load %arg4[%c0_1, %c0_2] : memref<32x32xf32, #tpu.memory_space<vmem>>, vector<32x32xf32>
    %c0_3 = arith.constant 0 : index
    %c0_4 = arith.constant 0 : index
    %2 = vector.load %arg6[%c0_3, %c0_4] : memref<8x32xf32, #tpu.memory_space<vmem>>, vector<8x32xf32>
    %c0_5 = arith.constant 0 : index
    %c0_6 = arith.constant 0 : index
    %3 = vector.load %arg3[%c0_5, %c0_6] : memref<32x1xf32, #tpu.memory_space<vmem>>, vector<32x1xf32>
    %4 = vector.shape_cast %3 : vector<32x1xf32> to vector<32x1xf32>
    %5 = vector.broadcast %4 : vector<32x1xf32> to vector<32x8xf32>
    %c0_7 = arith.constant 0 : index
    %c0_8 = arith.constant 0 : index
    %6 = vector.load %arg5[%c0_7, %c0_8] : memref<32x1xf32, #tpu.memory_space<vmem>>, vector<32x1xf32>
    %7 = vector.shape_cast %6 : vector<32x1xf32> to vector<32x1xf32>
    %8 = vector.broadcast %7 : vector<32x1xf32> to vector<32x8xf32>
    %c0_9 = arith.constant 0 : index
    %c0_10 = arith.constant 0 : index
    %9 = vector.load %arg7[%c0_9, %c0_10] : memref<8x1xf32, #tpu.memory_space<vmem>>, vector<8x1xf32>
    %10 = vector.shape_cast %9 : vector<8x1xf32> to vector<8x1xf32>
    %11 = vector.broadcast %10 : vector<8x1xf32> to vector<8x8xf32>
    %c0_11 = arith.constant 0 : index
    %c0_12 = arith.constant 0 : index
    %12 = vector.load %arg1[%c0_11, %c0_12] : memref<8x8xf32, #tpu.memory_space<vmem>>, vector<8x8xf32>
    %cst = arith.constant dense<0.000000e+00> : vector<32x8xf32>
    %13 = tpu.matmul %0, %12, %cst {dimension_numbers = #tpu.dot_dimension_numbers<[1], [0], [0], [1], [0, 0, 1, 1], [], []>} : vector<32x8xf32>, vector<8x8xf32>, vector<32x8xf32> -> vector<32x8xf32>
    %14 = arith.addf %13, %5 : vector<32x8xf32>
    %cst_13 = arith.constant 0.000000e+00 : f32
    %15 = vector.broadcast %cst_13 : f32 to vector<32x8xf32>
    %16 = arith.maximumf %14, %15 : vector<32x8xf32>
    %cst_14 = arith.constant dense<0.000000e+00> : vector<32x8xf32>
    %17 = tpu.matmul %1, %16, %cst_14 {dimension_numbers = #tpu.dot_dimension_numbers<[1], [0], [0], [1], [0, 0, 1, 1], [], []>} : vector<32x32xf32>, vector<32x8xf32>, vector<32x8xf32> -> vector<32x8xf32>
    %18 = arith.addf %17, %8 : vector<32x8xf32>
    %cst_15 = arith.constant 0.000000e+00 : f32
    %19 = vector.broadcast %cst_15 : f32 to vector<32x8xf32>
    %20 = arith.maximumf %18, %19 : vector<32x8xf32>
    %cst_16 = arith.constant dense<0.000000e+00> : vector<8x8xf32>
    %21 = tpu.matmul %2, %20, %cst_16 {dimension_numbers = #tpu.dot_dimension_numbers<[1], [0], [0], [1], [0, 0, 1, 1], [], []>} : vector<8x32xf32>, vector<32x8xf32>, vector<8x8xf32> -> vector<8x8xf32>
    %22 = arith.addf %21, %11 : vector<8x8xf32>
    %cst_17 = arith.constant 5.000000e-02 : f32
    %23 = vector.broadcast %cst_17 : f32 to vector<8x8xf32>
    %24 = arith.mulf %23, %22 : vector<8x8xf32>
    %25 = arith.addf %12, %24 : vector<8x8xf32>
    %cst_18 = arith.constant dense<0.000000e+00> : vector<32x8xf32>
    %26 = tpu.matmul %0, %25, %cst_18 {dimension_numbers = #tpu.dot_dimension_numbers<[1], [0], [0], [1], [0, 0, 1, 1], [], []>} : vector<32x8xf32>, vector<8x8xf32>, vector<32x8xf32> -> vector<32x8xf32>
    %27 = arith.addf %26, %5 : vector<32x8xf32>
    %cst_19 = arith.constant 0.000000e+00 : f32
    %28 = vector.broadcast %cst_19 : f32 to vector<32x8xf32>
    %29 = arith.maximumf %27, %28 : vector<32x8xf32>
    %cst_20 = arith.constant dense<0.000000e+00> : vector<32x8xf32>
    %30 = tpu.matmul %1, %29, %cst_20 {dimension_numbers = #tpu.dot_dimension_numbers<[1], [0], [0], [1], [0, 0, 1, 1], [], []>} : vector<32x32xf32>, vector<32x8xf32>, vector<32x8xf32> -> vector<32x8xf32>
    %31 = arith.addf %30, %8 : vector<32x8xf32>
    %cst_21 = arith.constant 0.000000e+00 : f32
    %32 = vector.broadcast %cst_21 : f32 to vector<32x8xf32>
    %33 = arith.maximumf %31, %32 : vector<32x8xf32>
    %cst_22 = arith.constant dense<0.000000e+00> : vector<8x8xf32>
    %34 = tpu.matmul %2, %33, %cst_22 {dimension_numbers = #tpu.dot_dimension_numbers<[1], [0], [0], [1], [0, 0, 1, 1], [], []>} : vector<8x32xf32>, vector<32x8xf32>, vector<8x8xf32> -> vector<8x8xf32>
    %35 = arith.addf %34, %11 : vector<8x8xf32>
    %cst_23 = arith.constant 5.000000e-02 : f32
    %36 = vector.broadcast %cst_23 : f32 to vector<8x8xf32>
    %37 = arith.mulf %36, %35 : vector<8x8xf32>
    %38 = arith.addf %12, %37 : vector<8x8xf32>
    %cst_24 = arith.constant dense<0.000000e+00> : vector<32x8xf32>
    %39 = tpu.matmul %0, %38, %cst_24 {dimension_numbers = #tpu.dot_dimension_numbers<[1], [0], [0], [1], [0, 0, 1, 1], [], []>} : vector<32x8xf32>, vector<8x8xf32>, vector<32x8xf32> -> vector<32x8xf32>
    %40 = arith.addf %39, %5 : vector<32x8xf32>
    %cst_25 = arith.constant 0.000000e+00 : f32
    %41 = vector.broadcast %cst_25 : f32 to vector<32x8xf32>
    %42 = arith.maximumf %40, %41 : vector<32x8xf32>
    %cst_26 = arith.constant dense<0.000000e+00> : vector<32x8xf32>
    %43 = tpu.matmul %1, %42, %cst_26 {dimension_numbers = #tpu.dot_dimension_numbers<[1], [0], [0], [1], [0, 0, 1, 1], [], []>} : vector<32x32xf32>, vector<32x8xf32>, vector<32x8xf32> -> vector<32x8xf32>
    %44 = arith.addf %43, %8 : vector<32x8xf32>
    %cst_27 = arith.constant 0.000000e+00 : f32
    %45 = vector.broadcast %cst_27 : f32 to vector<32x8xf32>
    %46 = arith.maximumf %44, %45 : vector<32x8xf32>
    %cst_28 = arith.constant dense<0.000000e+00> : vector<8x8xf32>
    %47 = tpu.matmul %2, %46, %cst_28 {dimension_numbers = #tpu.dot_dimension_numbers<[1], [0], [0], [1], [0, 0, 1, 1], [], []>} : vector<8x32xf32>, vector<32x8xf32>, vector<8x8xf32> -> vector<8x8xf32>
    %48 = arith.addf %47, %11 : vector<8x8xf32>
    %cst_29 = arith.constant 1.000000e-01 : f32
    %49 = vector.broadcast %cst_29 : f32 to vector<8x8xf32>
    %50 = arith.mulf %49, %48 : vector<8x8xf32>
    %51 = arith.addf %12, %50 : vector<8x8xf32>
    %cst_30 = arith.constant dense<0.000000e+00> : vector<32x8xf32>
    %52 = tpu.matmul %0, %51, %cst_30 {dimension_numbers = #tpu.dot_dimension_numbers<[1], [0], [0], [1], [0, 0, 1, 1], [], []>} : vector<32x8xf32>, vector<8x8xf32>, vector<32x8xf32> -> vector<32x8xf32>
    %53 = arith.addf %52, %5 : vector<32x8xf32>
    %cst_31 = arith.constant 0.000000e+00 : f32
    %54 = vector.broadcast %cst_31 : f32 to vector<32x8xf32>
    %55 = arith.maximumf %53, %54 : vector<32x8xf32>
    %cst_32 = arith.constant dense<0.000000e+00> : vector<32x8xf32>
    %56 = tpu.matmul %1, %55, %cst_32 {dimension_numbers = #tpu.dot_dimension_numbers<[1], [0], [0], [1], [0, 0, 1, 1], [], []>} : vector<32x32xf32>, vector<32x8xf32>, vector<32x8xf32> -> vector<32x8xf32>
    %57 = arith.addf %56, %8 : vector<32x8xf32>
    %cst_33 = arith.constant 0.000000e+00 : f32
    %58 = vector.broadcast %cst_33 : f32 to vector<32x8xf32>
    %59 = arith.maximumf %57, %58 : vector<32x8xf32>
    %cst_34 = arith.constant dense<0.000000e+00> : vector<8x8xf32>
    %60 = tpu.matmul %2, %59, %cst_34 {dimension_numbers = #tpu.dot_dimension_numbers<[1], [0], [0], [1], [0, 0, 1, 1], [], []>} : vector<8x32xf32>, vector<32x8xf32>, vector<8x8xf32> -> vector<8x8xf32>
    %61 = arith.addf %60, %11 : vector<8x8xf32>
    %62 = arith.addf %22, %61 : vector<8x8xf32>
    %cst_35 = arith.constant 0.0166666675 : f32
    %63 = vector.broadcast %cst_35 : f32 to vector<8x8xf32>
    %64 = arith.mulf %63, %62 : vector<8x8xf32>
    %65 = arith.addf %12, %64 : vector<8x8xf32>
    %66 = arith.addf %35, %48 : vector<8x8xf32>
    %cst_36 = arith.constant 0.0333333351 : f32
    %67 = vector.broadcast %cst_36 : f32 to vector<8x8xf32>
    %68 = arith.mulf %67, %66 : vector<8x8xf32>
    %69 = arith.addf %65, %68 : vector<8x8xf32>
    %c0_37 = arith.constant 0 : index
    %c0_38 = arith.constant 0 : index
    %70 = vector.load %arg8[%c0_37, %c0_38] : memref<8x8xf32, #tpu.memory_space<vmem>>, vector<8x8xf32>
    tpu.vector_store %arg8[%c0_37, %c0_38], %69 {strides = array<i32>} : memref<8x8xf32, #tpu.memory_space<vmem>>, vector<8x8xf32>,
    return
  }
  func.func @transform_0(%arg0: i32) -> (i32, i32) {
    %c0_i32 = arith.constant 0 : i32
    %c0_i32_0 = arith.constant 0 : i32
    return %c0_i32, %arg0 : i32, i32
  }
  func.func @transform_1(%arg0: i32) -> (i32, i32) {
    %c0_i32 = arith.constant 0 : i32
    %c0_i32_0 = arith.constant 0 : i32
    %c0_i32_1 = arith.constant 0 : i32
    return %c0_i32, %c0_i32_0 : i32, i32
  }
  func.func @transform_2(%arg0: i32) -> (i32, i32) {
    %c0_i32 = arith.constant 0 : i32
    %c0_i32_0 = arith.constant 0 : i32
    %c0_i32_1 = arith.constant 0 : i32
    return %c0_i32, %c0_i32_0 : i32, i32
  }
  func.func @transform_3(%arg0: i32) -> (i32, i32) {
    %c0_i32 = arith.constant 0 : i32
    %c0_i32_0 = arith.constant 0 : i32
    %c0_i32_1 = arith.constant 0 : i32
    return %c0_i32, %c0_i32_0 : i32, i32
  }
  func.func @transform_4(%arg0: i32) -> (i32, i32) {
    %c0_i32 = arith.constant 0 : i32
    %c0_i32_0 = arith.constant 0 : i32
    %c0_i32_1 = arith.constant 0 : i32
    return %c0_i32, %c0_i32_0 : i32, i32
  }
  func.func @transform_5(%arg0: i32) -> (i32, i32) {
    %c0_i32 = arith.constant 0 : i32
    %c0_i32_0 = arith.constant 0 : i32
    %c0_i32_1 = arith.constant 0 : i32
    return %c0_i32, %c0_i32_0 : i32, i32
  }
  func.func @transform_6(%arg0: i32) -> (i32, i32) {
    %c0_i32 = arith.constant 0 : i32
    %c0_i32_0 = arith.constant 0 : i32
    %c0_i32_1 = arith.constant 0 : i32
    return %c0_i32, %c0_i32_0 : i32, i32
  }
  func.func @transform_7(%arg0: i32) -> (i32, i32) {
    %c0_i32 = arith.constant 0 : i32
    %c0_i32_0 = arith.constant 0 : i32
    return %c0_i32, %arg0 : i32, i32
  }
}

</mosaic_0001>

<bundles_post_ra>
// kernel: _lambda_.1
= control target key start
LH: loop header
LB: loop body
LE: loop exit
PB: predicated region body
PF: predicated region fallthrough
CT: control target
= control target key end

     0   :  { %12 = vsyncpa [#allocation3], 0  ;;  %s1793_s0 = inlined_call_operand.vmem [shape: f32[8,8], index: 0, kind: input, shape index: {}, may-alias: {0,7}]   ;;  %s1794_s1 = inlined_call_operand.hbm [shape: f32[32,8], index: 1, kind: input, shape index: {}]   ;;  %s1795_s2 = inlined_call_operand.hbm [shape: f32[32,1], index: 2, kind: input, shape index: {}]   ;;  %s1796_s3 = inlined_call_operand.hbm [shape: f32[32,32], index: 3, kind: input, shape index: {}]   ;;  %s1797_s4 = inlined_call_operand.hbm [shape: f32[32,1], index: 4, kind: input, shape index: {}]   ;;  %s1798_s5 = inlined_call_operand.vmem [shape: f32[8,32], index: 5, kind: input, shape index: {}]   ;;  %s1799_s6 = inlined_call_operand.vmem [shape: f32[8,1], index: 6, kind: input, shape index: {}]   ;;  %s1800_s7 = inlined_call_operand.vmem [shape: f32[8,8], index: 7, kind: output, shape index: {}, may-alias: {0,7}]  }
   0x1   :  { %13 = vsyncpa [#allocation5], 0 }
   0x2   :  { %14 = vsyncpa [#allocation8], 0  ;;  %s1523_s24 = smov [#allocation4]   ;;  %s1524_s26 = smov [#allocation2]  }
   0x3   :  { %s34_s25 = sshll.u32 %s1523_s24, 4  ;;  %s22_s27 = sshll.u32 %s1524_s26, 4  ;;  %s35_s25 = int_to_ptr.vmem [resolvable:$true] %s34_s25  ;;  %s23_s27 = int_to_ptr.vmem [resolvable:$true] %s22_s27 }
   0x4   :  { %s1445_s28 = scalar_lea.vmem %s35_s25, 512  ;;  %p1450_p1 = scmp.lt.s32.totalorder %s35_s25, %s35_s25 }
   0x5   :  { %p1446_p0 = scmp.ne.s32.totalorder %s35_s25, %s1445_s28  ;;  %p1451_p2 = scmp.lt.s32.totalorder %s1445_s28, %s1445_s28 }
   0x7   :  { %p1452_p3 = por %p1451_p2, %p1450_p1 }
   0x9   :  { %p1453_p4 = pnand %p1452_p3, %p1446_p0 }
   0xb   :  { %1456 = shalt.err (!%p1453_p4)
}
   0xc   :  { %s1525_s29 = smov 128   ;;  %s1526_s30 = smov 8  }
   0xd   :  { %40 = dma.hbm_to_vmem [thread:$0]  %s1795_s2, 512, %s35_s25, [#allocation5], %s1525_s29, %s1525_s29, %s1526_s30  }
   0xe   :  { %s1465_s10 = scalar_lea.vmem %s23_s27, 512  ;;  %p1470_p6 = scmp.lt.s32.totalorder %s23_s27, %s23_s27 }
   0xf   :  { %p1466_p5 = scmp.ne.s32.totalorder %s23_s27, %s1465_s10  ;;  %p1471_p7 = scmp.lt.s32.totalorder %s1465_s10, %s1465_s10 }
  0x11   :  { %p1472_p8 = por %p1471_p7, %p1470_p6 }
  0x13   :  { %p1473_p9 = pnand %p1472_p8, %p1466_p5 }
  0x15   :  { %1476 = shalt.err (!%p1473_p9)
}
  0x16   :  { %28 = dma.hbm_to_vmem [thread:$0]  %s1794_s1, 512, %s23_s27, [#allocation3], %s1525_s29, %s1525_s29, %s1526_s30  }
  0x17   :  { %s1527_s13 = smov [#allocation6]   ;;  %s1528_s15 = smov [#allocation7]  }
  0x18   :  { %s46_s14 = sshll.u32 %s1527_s13, 4  ;;  %s58_s16 = sshll.u32 %s1528_s15, 4  ;;  %s47_s14 = int_to_ptr.vmem [resolvable:$true] %s46_s14  ;;  %s59_s16 = int_to_ptr.vmem [resolvable:$true] %s58_s16 }
  0x19   :  { %s1485_s2 = scalar_lea.vmem %s47_s14, 512  ;;  %p1490_p11 = scmp.lt.s32.totalorder %s47_s14, %s47_s14 }
  0x1a   :  { %p1486_p10 = scmp.ne.s32.totalorder %s47_s14, %s1485_s2  ;;  %p1491_p12 = scmp.lt.s32.totalorder %s1485_s2, %s1485_s2 }
  0x1c   :  { %p1492_p13 = por %p1491_p12, %p1490_p11 }
  0x1e   :  { %p1493_p0 = pnand %p1492_p13, %p1486_p10 }
  0x20   :  { %1496 = shalt.err (!%p1493_p0)
}
  0x21   :  { %52 = dma.hbm_to_vmem [thread:$0]  %s1796_s3, 512, %s47_s14, [#allocation5], %s1525_s29, %s1525_s29, %s1526_s30  }
  0x22   :  { %s1505_s1 = scalar_lea.vmem %s59_s16, 512  ;;  %p1510_p2 = scmp.lt.s32.totalorder %s59_s16, %s59_s16 }
  0x23   :  { %p1506_p1 = scmp.ne.s32.totalorder %s59_s16, %s1505_s1  ;;  %p1511_p3 = scmp.lt.s32.totalorder %s1505_s1, %s1505_s1 }
  0x25   :  { %p1512_p4 = por %p1511_p3, %p1510_p2 }
  0x27   :  { %p1513_p5 = pnand %p1512_p4, %p1506_p1 }
  0x29   :  { %1516 = shalt.err (!%p1513_p5)
}
  0x2a   :  { %64 = dma.hbm_to_vmem [thread:$0]  %s1797_s4, 512, %s59_s16, [#allocation8], %s1525_s29, %s1525_s29, %s1526_s30  }
  0x2b   :  { %1517 = dma.done.wait [#allocation3], 512  }
  0x2c   :  { %1518 = vsyncadd [#allocation3], 4294966784 }
  0x2d   :  { %1519 = dma.done.wait [#allocation5], 1024  }
  0x2e   :  { %1520 = vsyncadd [#allocation5], 4294966272 }
  0x2f   :  { %1521 = dma.done.wait [#allocation8], 512  }
  0x30   :  { %1522 = vsyncadd [#allocation8], 4294966784  ;;  %v1529_v0 = vmov 0   ;;  %vm145_vm0 = vcmask 64512   ;;  %v1599_v1 = vld [vmem:[%s1793_s0] sm:$0xff]  ;;  %v1603_v3 = vld [vmem:[#allocation2 + $0x8] sm:$0xff] }
  0x31   :  { %1435 = vset.pattern.permute.xlu0 %v1529_v0  ;;  %1436 = vset.pattern.permute.xlu1 %v1529_v0  ;;  %v1601_v2 = vld [vmem:[#allocation2] sm:$0xff]  ;;  %v1608_v4 = vld [vmem:[#allocation2 + $0x10] sm:$0xff]  ;;  %v93_v5 = vld [vmem:[#allocation4 + $0x18] sm:$0xff]  ;;  %vm247_vm1 = vcmask 261120   ;;  %v1530_v35 = vmov 0.0   ;;  %vm1531_vm2 = vmmov 0  }
  0x32   :  { %1294 = vmatprep.subr.mxu0 %v1599_v1  ;;  %1296 = vmatprep.mubr.msk.f32.mxu0 %vm145_vm0, %v1601_v2  ;;  %v91_v6 = vld [vmem:[#allocation4 + $0x8] sm:$0xff]  ;;  %v92_v7 = vld [vmem:[#allocation4 + $0x10] sm:$0xff]  ;;  %v1615_v8 = vld [vmem:[#allocation2 + $0x18] sm:$0xff] }
  0x33   :  { %1295 = vmatpush3.msra.mxu0 %v1599_v1  ;;  %111 = vperm.xlu0 %1435, %v93_v5   ;;  %v90_v9 = vld [vmem:[#allocation4] sm:$0xff]  ;;  %v117_v10 = vld [vmem:[#allocation7 + $0x18] sm:$0xff]  ;;  %v116_v11 = vld [vmem:[#allocation7 + $0x10] sm:$0xff] }
  0x34   :  { %1297 = vmatmul.mubr.msk.f32.vlgmr.msra.gmra.mxu0 %vm145_vm0, %v1603_v3  ;;  %101 = vperm.xlu1 %1436, %v91_v6   ;;  %v115_v12 = vld [vmem:[#allocation7 + $0x8] sm:$0xff]  ;;  %v114_v13 = vld [vmem:[#allocation7] sm:$0xff]  ;;  %v1640_v33 = vld [vmem:[#allocation6 + $0x10] sm:$0xff] }
  0x35   :  { %1299 = vmatprep.mubr.msk.f32.mxu0 %vm145_vm0, %v1608_v4  ;;  %v138_v14 = vld [vmem:[%s1799_s6] sm:$0xff]  ;;  %v1638_v32 = vld [vmem:[#allocation6 + $0x8] sm:$0xff]  ;;  %v1646_v34 = vld [vmem:[#allocation6 + $0x18] sm:$0xff]  ;;  %1316 = vmatprep.subr.mxu0 %v1530_v35 }
  0x36   :  { %v1622_v15 = vld [vmem:[#allocation6] sm:$0xff] }
  0x37   :  { %106 = vperm.xlu0 %1435, %v92_v7   ;;  %1310 = vmatprep.mubr.msk.f32.mxu1 %vm247_vm1, %v1622_v15  ;;  %v1672_v52 = vld [vmem:[%s1798_s5] sm:$0xff] }
  0x38   :  { %1300 = vmatmul.mubr.msk.f32.gmra.mxu0 %vm145_vm0, %v1615_v8  ;;  %96 = vperm.xlu1 %1436, %v90_v9  }
  0x39   :  { %1324 = vmatprep.mubr.msk.f32.mxu0 %vm1531_vm2, %v1530_v35 }
  0x3b   :  { %135 = vperm.xlu0 %1435, %v117_v10  }
  0x3c   :  { %130 = vperm.xlu1 %1436, %v116_v11  }
  0x3f   :  { %125 = vperm.xlu0 %1435, %v115_v12  }
  0x40   :  { %120 = vperm.xlu1 %1436, %v114_v13  }
  0x43   :  { %141 = vperm.xlu0 %1435, %v138_v14  }
  0xae   :  { %v1626_v16 = vpop.permute.xlu0 %111 }
  0xaf   :  { %v1628_v18 = vpop.permute.xlu1 %101 }
  0xb2   :  { %v1631_v22 = vpop.permute.xlu0 %106 }
  0xb3   :  { %v1635_v27 = vpop.permute.xlu1 %96 }
  0xb6   :  { %v1655_v36 = vpop.permute.xlu0 %135 }
  0xb7   :  { %v1657_v38 = vpop.permute.xlu1 %130 }
  0xba   :  { %v1660_v42 = vpop.permute.xlu0 %125 }
  0xbb   :  { %v1664_v47 = vpop.permute.xlu1 %120 }
  0xbe   :  { %v1679_v53 = vpop.permute.xlu0 %141 }
  0xf4   :  { %v1298_v17 = vpop.f32.mrf.mxu0 }
  0xf5   :  { %v230_v24 = vadd.f32 %v1298_v17, %v1628_v18 }
  0xf6   :  { %v224_v19 = vpop.f32.mrf.mxu0 }
  0xf7   :  { %v225_v28 = vadd.f32 %v224_v19, %v1635_v27  ;;  %v244_v30 = vmax.f32 %v230_v24, 0.0 }
  0xf8   :  { %v1301_v20 = vpop.f32.mrf.mxu0 }
  0xf9   :  { %v240_v21 = vadd.f32 %v1301_v20, %v1626_v16  ;;  %v243_v31 = vmax.f32 %v225_v28, 0.0 }
  0xfa   :  { %v234_v23 = vpop.f32.mrf.mxu0 }
  0xfb   :  { %v246_v25 = vmax.f32 %v240_v21, 0.0  ;;  %v235_v26 = vadd.f32 %v234_v23, %v1631_v22 }
  0xfd   :  { %v245_v29 = vmax.f32 %v235_v26, 0.0  ;;  %1302 = vmatprep.subr.mxu1 %v246_v25 }
  0xfe   :  { %1303 = vmatpush3.msra.mxu1 %v246_v25 }
  0xff   :  { %1304 = vmatprep.subr.mxu1 %v245_v29 }
 0x100   :  { %1305 = vmatpush3.msra.mxu1 %v245_v29 }
 0x101   :  { %1306 = vmatprep.subr.mxu1 %v244_v30 }
 0x102   :  { %1307 = vmatpush3.msra.mxu1 %v244_v30 }
 0x103   :  { %1308 = vmatprep.subr.mxu1 %v243_v31 }
 0x104   :  { %1309 = vmatpush3.msra.mxu1 %v243_v31 }
 0x105   :  { %1311 = vmatmul.mubr.msk.f32.vlgmr.msra.gmra.mxu1 %vm247_vm1, %v1638_v32 }
 0x106   :  { %1313 = vmatprep.mubr.msk.f32.mxu1 %vm247_vm1, %v1640_v33 }
 0x109   :  { %1314 = vmatmul.mubr.msk.f32.gmra.mxu1 %vm247_vm1, %v1646_v34 }
 0x10a   :  { %1343 = vmatprep.mubr.msk.f32.mxu1 %vm247_vm1, %v1622_v15 }
 0x1c5   :  { %v1312_v37 = vpop.f32.mrf.mxu1 }
 0x1c6   :  { %v332_v44 = vadd.f32 %v1312_v37, %v1660_v42 }
 0x1c7   :  { %v326_v39 = vpop.f32.mrf.mxu1 }
 0x1c8   :  { %v327_v48 = vadd.f32 %v326_v39, %v1664_v47  ;;  %v346_v50 = vmax.f32 %v332_v44, 0.0 }
 0x1c9   :  { %v1315_v40 = vpop.f32.mrf.mxu1 }
 0x1ca   :  { %v342_v41 = vadd.f32 %v1315_v40, %v1655_v36  ;;  %v345_v51 = vmax.f32 %v327_v48, 0.0 }
 0x1cb   :  { %v336_v43 = vpop.f32.mrf.mxu1 }
 0x1cc   :  { %v348_v45 = vmax.f32 %v342_v41, 0.0  ;;  %v337_v46 = vadd.f32 %v336_v43, %v1657_v38 }
 0x1ce   :  { %v347_v49 = vmax.f32 %v337_v46, 0.0  ;;  %1317 = vmatpush3.msra.mxu0 %v348_v45 }
 0x1cf   :  { %1318 = vmatprep.subr.mxu0 %v1530_v35 }
 0x1d0   :  { %1319 = vmatpush3.msra.mxu0 %v347_v49 }
 0x1d1   :  { %1320 = vmatprep.subr.mxu0 %v1530_v35 }
 0x1d2   :  { %1321 = vmatpush3.msra.mxu0 %v346_v50 }
 0x1d3   :  { %1322 = vmatprep.subr.mxu0 %v1530_v35 }
 0x1d4   :  { %1323 = vmatpush3.msra.mxu0 %v345_v51 }
 0x1d5   :  { %1325 = vmatmul.mubr.msk.f32.vlgmr.msra.gmra.mxu0 %vm247_vm1, %v1672_v52 }
 0x1d6   :  { %1329 = vmatprep.mubr.msk.f32.mxu0 %vm145_vm0, %v1601_v2 }
 0x295   :  { %v418_v54 = vpop.f32.mrf.mxu0 }
 0x296   :  { %v1682_v55 = vadd.f32 %v418_v54, %v1679_v53 }
 0x297   :  { %v1326_v56 = vpop.f32.mrf.mxu0 }
 0x298   :  { %v422_v57 = vmul.f32 0.05, %v1682_v55 }
 0x29a   :  { %v423_v58 = vadd.f32 %v422_v57, %v1599_v1 }
 0x29c   :  { %1327 = vmatprep.subr.mxu0 %v423_v58 }
 0x29d   :  { %1328 = vmatpush3.msra.mxu0 %v423_v58 }
 0x29e   :  { %1330 = vmatmul.mubr.msk.f32.vlgmr.msra.gmra.mxu0 %vm145_vm0, %v1603_v3  ;;  %1349 = vmatprep.subr.mxu0 %v1530_v35 }
 0x29f   :  { %1332 = vmatprep.mubr.msk.f32.mxu0 %vm145_vm0, %v1608_v4 }
 0x2a2   :  { %1333 = vmatmul.mubr.msk.f32.gmra.mxu0 %vm145_vm0, %v1615_v8 }
 0x2a3   :  { %1357 = vmatprep.mubr.msk.f32.mxu0 %vm1531_vm2, %v1530_v35 }
 0x35e   :  { %v1331_v59 = vpop.f32.mrf.mxu0 }
 0x35f   :  { %v496_v0 = vadd.f32 %v1331_v59, %v1628_v18 }
 0x360   :  { %v490_v60 = vpop.f32.mrf.mxu0 }
 0x361   :  { %v491_v7 = vadd.f32 %v490_v60, %v1635_v27  ;;  %v510_v10 = vmax.f32 %v496_v0, 0.0 }
 0x362   :  { %v1334_v61 = vpop.f32.mrf.mxu0 }
 0x363   :  { %v506_v62 = vadd.f32 %v1334_v61, %v1626_v16  ;;  %v509_v11 = vmax.f32 %v491_v7, 0.0 }
 0x364   :  { %v500_v63 = vpop.f32.mrf.mxu0 }
 0x365   :  { %v512_v5 = vmax.f32 %v506_v62, 0.0  ;;  %v501_v6 = vadd.f32 %v500_v63, %v1631_v22 }
 0x367   :  { %v511_v9 = vmax.f32 %v501_v6, 0.0  ;;  %1335 = vmatprep.subr.mxu1 %v512_v5 }
 0x368   :  { %1336 = vmatpush3.msra.mxu1 %v512_v5 }
 0x369   :  { %1337 = vmatprep.subr.mxu1 %v511_v9 }
 0x36a   :  { %1338 = vmatpush3.msra.mxu1 %v511_v9 }
 0x36b   :  { %1339 = vmatprep.subr.mxu1 %v510_v10 }
 0x36c   :  { %1340 = vmatpush3.msra.mxu1 %v510_v10 }
 0x36d   :  { %1341 = vmatprep.subr.mxu1 %v509_v11 }
 0x36e   :  { %1342 = vmatpush3.msra.mxu1 %v509_v11 }
 0x36f   :  { %1344 = vmatmul.mubr.msk.f32.vlgmr.msra.gmra.mxu1 %vm247_vm1, %v1638_v32 }
 0x370   :  { %1346 = vmatprep.mubr.msk.f32.mxu1 %vm247_vm1, %v1640_v33 }
 0x373   :  { %1347 = vmatmul.mubr.msk.f32.gmra.mxu1 %vm247_vm1, %v1646_v34 }
 0x374   :  { %1362 = vmatprep.mubr.msk.f32.mxu1 %vm145_vm0, %v1601_v2 }
 0x42f   :  { %v1345_v12 = vpop.f32.mrf.mxu1 }
 0x430   :  { %v585_v20 = vadd.f32 %v1345_v12, %v1660_v42 }
 0x431   :  { %v579_v13 = vpop.f32.mrf.mxu1 }
 0x432   :  { %v580_v24 = vadd.f32 %v579_v13, %v1664_v47  ;;  %v599_v26 = vmax.f32 %v585_v20, 0.0 }
 0x433   :  { %v1348_v14 = vpop.f32.mrf.mxu1 }
 0x434   :  { %v595_v17 = vadd.f32 %v1348_v14, %v1655_v36  ;;  %v598_v28 = vmax.f32 %v580_v24, 0.0 }
 0x435   :  { %v589_v19 = vpop.f32.mrf.mxu1 }
 0x436   :  { %v601_v21 = vmax.f32 %v595_v17, 0.0  ;;  %v590_v23 = vadd.f32 %v589_v19, %v1657_v38 }
 0x438   :  { %v600_v25 = vmax.f32 %v590_v23, 0.0  ;;  %1350 = vmatpush3.msra.mxu0 %v601_v21 }
 0x439   :  { %1351 = vmatprep.subr.mxu0 %v1530_v35 }
 0x43a   :  { %1352 = vmatpush3.msra.mxu0 %v600_v25 }
 0x43b   :  { %1353 = vmatprep.subr.mxu0 %v1530_v35 }
 0x43c   :  { %1354 = vmatpush3.msra.mxu0 %v599_v26 }
 0x43d   :  { %1355 = vmatprep.subr.mxu0 %v1530_v35 }
 0x43e   :  { %1356 = vmatpush3.msra.mxu0 %v598_v28 }
 0x43f   :  { %1358 = vmatmul.mubr.msk.f32.vlgmr.msra.gmra.mxu0 %vm247_vm1, %v1672_v52 }
 0x440   :  { %1376 = vmatprep.mubr.msk.f32.mxu0 %vm247_vm1, %v1622_v15 }
 0x4ff   :  { %v668_v29 = vpop.f32.mrf.mxu0 }
 0x500   :  { %v1719_v30 = vadd.f32 %v668_v29, %v1679_v53 }
 0x501   :  { %v1359_v31 = vpop.f32.mrf.mxu0 }
 0x502   :  { %v672_v37 = vmul.f32 0.05, %v1719_v30 }
 0x504   :  { %v673_v39 = vadd.f32 %v672_v37, %v1599_v1 }
 0x506   :  { %1360 = vmatprep.subr.mxu1 %v673_v39 }
 0x507   :  { %1361 = vmatpush3.msra.mxu1 %v673_v39 }
 0x508   :  { %1363 = vmatmul.mubr.msk.f32.vlgmr.msra.gmra.mxu1 %vm145_vm0, %v1603_v3  ;;  %1382 = vmatprep.subr.mxu1 %v1530_v35 }
 0x509   :  { %1365 = vmatprep.mubr.msk.f32.mxu1 %vm145_vm0, %v1608_v4 }
 0x50c   :  { %1366 = vmatmul.mubr.msk.f32.gmra.mxu1 %vm145_vm0, %v1615_v8 }
 0x50d   :  { %1390 = vmatprep.mubr.msk.f32.mxu1 %vm1531_vm2, %v1530_v35 }
 0x5c8   :  { %v1364_v40 = vpop.f32.mrf.mxu1 }
 0x5c9   :  { %v746_v46 = vadd.f32 %v1364_v40, %v1628_v18 }
 0x5ca   :  { %v740_v41 = vpop.f32.mrf.mxu1 }
 0x5cb   :  { %v741_v50 = vadd.f32 %v740_v41, %v1635_v27  ;;  %v760_v54 = vmax.f32 %v746_v46, 0.0 }
 0x5cc   :  { %v1367_v43 = vpop.f32.mrf.mxu1 }
 0x5cd   :  { %v756_v44 = vadd.f32 %v1367_v43, %v1626_v16  ;;  %v759_v56 = vmax.f32 %v741_v50, 0.0 }
 0x5ce   :  { %v750_v45 = vpop.f32.mrf.mxu1 }
 0x5cf   :  { %v762_v48 = vmax.f32 %v756_v44, 0.0  ;;  %v751_v49 = vadd.f32 %v750_v45, %v1631_v22 }
 0x5d1   :  { %v761_v51 = vmax.f32 %v751_v49, 0.0  ;;  %1368 = vmatprep.subr.mxu0 %v762_v48 }
 0x5d2   :  { %1369 = vmatpush3.msra.mxu0 %v762_v48 }
 0x5d3   :  { %1370 = vmatprep.subr.mxu0 %v761_v51 }
 0x5d4   :  { %1371 = vmatpush3.msra.mxu0 %v761_v51 }
 0x5d5   :  { %1372 = vmatprep.subr.mxu0 %v760_v54 }
 0x5d6   :  { %1373 = vmatpush3.msra.mxu0 %v760_v54 }
 0x5d7   :  { %1374 = vmatprep.subr.mxu0 %v759_v56 }
 0x5d8   :  { %1375 = vmatpush3.msra.mxu0 %v759_v56 }
 0x5d9   :  { %1377 = vmatmul.mubr.msk.f32.vlgmr.msra.gmra.mxu0 %vm247_vm1, %v1638_v32 }
 0x5da   :  { %1379 = vmatprep.mubr.msk.f32.mxu0 %vm247_vm1, %v1640_v33 }
 0x5dd   :  { %1380 = vmatmul.mubr.msk.f32.gmra.mxu0 %vm247_vm1, %v1646_v34 }
 0x5de   :  { %1409 = vmatprep.mubr.msk.f32.mxu0 %vm247_vm1, %v1622_v15 }
 0x699   :  { %v1378_v57 = vpop.f32.mrf.mxu0 }
 0x69a   :  { %v835_v62 = vadd.f32 %v1378_v57, %v1660_v42 }
 0x69b   :  { %v829_v58 = vpop.f32.mrf.mxu0 }
 0x69c   :  { %v830_v5 = vadd.f32 %v829_v58, %v1664_v47  ;;  %v849_v7 = vmax.f32 %v835_v62, 0.0 }
 0x69d   :  { %v1381_v59 = vpop.f32.mrf.mxu0 }
 0x69e   :  { %v845_v60 = vadd.f32 %v1381_v59, %v1655_v36  ;;  %v848_v15 = vmax.f32 %v830_v5, 0.0 }
 0x69f   :  { %v839_v61 = vpop.f32.mrf.mxu0 }
 0x6a0   :  { %v851_v63 = vmax.f32 %v845_v60, 0.0  ;;  %v840_v0 = vadd.f32 %v839_v61, %v1657_v38 }
 0x6a2   :  { %v850_v6 = vmax.f32 %v840_v0, 0.0  ;;  %1383 = vmatpush3.msra.mxu1 %v851_v63 }
 0x6a3   :  { %1384 = vmatprep.subr.mxu1 %v1530_v35 }
 0x6a4   :  { %1385 = vmatpush3.msra.mxu1 %v850_v6 }
 0x6a5   :  { %1386 = vmatprep.subr.mxu1 %v1530_v35 }
 0x6a6   :  { %1387 = vmatpush3.msra.mxu1 %v849_v7 }
 0x6a7   :  { %1388 = vmatprep.subr.mxu1 %v1530_v35 }
 0x6a8   :  { %1389 = vmatpush3.msra.mxu1 %v848_v15 }
 0x6a9   :  { %1391 = vmatmul.mubr.msk.f32.vlgmr.msra.gmra.mxu1 %vm247_vm1, %v1672_v52 }
 0x6aa   :  { %1395 = vmatprep.mubr.msk.f32.mxu1 %vm145_vm0, %v1601_v2 }
 0x769   :  { %v918_v9 = vpop.f32.mrf.mxu1 }
 0x76a   :  { %v919_v10 = vadd.f32 %v918_v9, %v1679_v53 }
 0x76b   :  { %v1392_v11 = vpop.f32.mrf.mxu1 }
 0x76c   :  { %v922_v12 = vmul.f32 0.1, %v919_v10 }
 0x76e   :  { %v923_v13 = vadd.f32 %v922_v12, %v1599_v1 }
 0x770   :  { %1393 = vmatprep.subr.mxu1 %v923_v13 }
 0x771   :  { %1394 = vmatpush3.msra.mxu1 %v923_v13 }
 0x772   :  { %1396 = vmatmul.mubr.msk.f32.vlgmr.msra.gmra.mxu1 %vm145_vm0, %v1603_v3  ;;  %1415 = vmatprep.subr.mxu1 %v1530_v35 }
 0x773   :  { %1398 = vmatprep.mubr.msk.f32.mxu1 %vm145_vm0, %v1608_v4 }
 0x776   :  { %1399 = vmatmul.mubr.msk.f32.gmra.mxu1 %vm145_vm0, %v1615_v8 }
 0x777   :  { %1423 = vmatprep.mubr.msk.f32.mxu1 %vm1531_vm2, %v1530_v35 }
 0x832   :  { %v1397_v2 = vpop.f32.mrf.mxu1 }
 0x833   :  { %v996_v21 = vadd.f32 %v1397_v2, %v1628_v18 }
 0x834   :  { %v990_v14 = vpop.f32.mrf.mxu1 }
 0x835   :  { %v991_v24 = vadd.f32 %v990_v14, %v1635_v27  ;;  %v1010_v8 = vmax.f32 %v996_v21, 0.0 }
 0x836   :  { %v1400_v17 = vpop.f32.mrf.mxu1 }
 0x837   :  { %v1006_v19 = vadd.f32 %v1400_v17, %v1626_v16  ;;  %v1009_v25 = vmax.f32 %v991_v24, 0.0 }
 0x838   :  { %v1000_v20 = vpop.f32.mrf.mxu1 }
 0x839   :  { %v1012_v3 = vmax.f32 %v1006_v19, 0.0  ;;  %v1001_v23 = vadd.f32 %v1000_v20, %v1631_v22 }
 0x83b   :  { %v1011_v4 = vmax.f32 %v1001_v23, 0.0  ;;  %1401 = vmatprep.subr.mxu0 %v1012_v3 }
 0x83c   :  { %1402 = vmatpush3.msra.mxu0 %v1012_v3 }
 0x83d   :  { %1403 = vmatprep.subr.mxu0 %v1011_v4 }
 0x83e   :  { %1404 = vmatpush3.msra.mxu0 %v1011_v4 }
 0x83f   :  { %1405 = vmatprep.subr.mxu0 %v1010_v8 }
 0x840   :  { %1406 = vmatpush3.msra.mxu0 %v1010_v8 }
 0x841   :  { %1407 = vmatprep.subr.mxu0 %v1009_v25 }
 0x842   :  { %1408 = vmatpush3.msra.mxu0 %v1009_v25 }
 0x843   :  { %1410 = vmatmul.mubr.msk.f32.vlgmr.msra.gmra.mxu0 %vm247_vm1, %v1638_v32 }
 0x844   :  { %1412 = vmatprep.mubr.msk.f32.mxu0 %vm247_vm1, %v1640_v33 }
 0x847   :  { %1413 = vmatmul.mubr.msk.f32.gmra.mxu0 %vm247_vm1, %v1646_v34 }
 0x903   :  { %v1411_v16 = vpop.f32.mrf.mxu0 }
 0x904   :  { %v1085_v28 = vadd.f32 %v1411_v16, %v1660_v42 }
 0x905   :  { %v1079_v18 = vpop.f32.mrf.mxu0 }
 0x906   :  { %v1080_v37 = vadd.f32 %v1079_v18, %v1664_v47  ;;  %v1099_v33 = vmax.f32 %v1085_v28, 0.0  ;;  %v1175_v47 = vadd.f32 %v919_v10, %v1719_v30 }
 0x907   :  { %v1414_v22 = vpop.f32.mrf.mxu0 }
 0x908   :  { %v1095_v27 = vadd.f32 %v1414_v22, %v1655_v36  ;;  %v1098_v34 = vmax.f32 %v1080_v37, 0.0  ;;  %v1176_v41 = vmul.f32 0.033333335, %v1175_v47 }
 0x909   :  { %v1089_v26 = vpop.f32.mrf.mxu0 }
 0x90a   :  { %v1101_v29 = vmax.f32 %v1095_v27, 0.0  ;;  %v1090_v31 = vadd.f32 %v1089_v26, %v1657_v38 }
 0x90c   :  { %v1100_v32 = vmax.f32 %v1090_v31, 0.0  ;;  %1416 = vmatpush3.msra.mxu1 %v1101_v29 }
 0x90d   :  { %1417 = vmatprep.subr.mxu1 %v1530_v35 }
 0x90e   :  { %1418 = vmatpush3.msra.mxu1 %v1100_v32 }
 0x90f   :  { %1419 = vmatprep.subr.mxu1 %v1530_v35 }
 0x910   :  { %1420 = vmatpush3.msra.mxu1 %v1099_v33 }
 0x911   :  { %1421 = vmatprep.subr.mxu1 %v1530_v35 }
 0x912   :  { %1422 = vmatpush3.msra.mxu1 %v1098_v34 }
 0x913   :  { %1424 = vmatmul.mubr.msk.f32.vlgmr.msra.gmra.mxu1 %vm247_vm1, %v1672_v52 }
 0x9d3   :  { %v1168_v36 = vpop.f32.mrf.mxu1 }
 0x9d4   :  { %v1169_v38 = vadd.f32 %v1168_v36, %v1679_v53 }
 0x9d5   :  { %v1425_v42 = vpop.f32.mrf.mxu1 }
 0x9d6   :  { %v1172_v39 = vadd.f32 %v1169_v38, %v1682_v55 }
 0x9d8   :  { %v1173_v40 = vmul.f32 0.016666668, %v1172_v39 }
 0x9da   :  { %v1174_v43 = vadd.f32 %v1173_v40, %v1599_v1 }
 0x9dc   :  { %v1177_v44 = vadd.f32 %v1176_v41, %v1174_v43 }
 0x9de   :  { %1178 = vst.msk [vmem:[%s1800_s7] sm:$0xff] %vm145_vm0, %v1177_v44 }
 0x9df   :  { %1183 = vsyncpa [#allocation3], 1 }
 0x9e0   :  { %1184 = vsyncpa [#allocation5], 1 }
 0x9e1   :  { %1185 = vsyncpa [#allocation8], 1 }

</bundles_post_ra>
